<compile_context>
chip_gen: v6e
topology: v6e:2x2x1
jax: 0.10.0
libtpu: 0.0.40
codegen_flags: <defaults>
</compile_context>

<pallas_src>
import math

import jax
import jax.numpy as jnp
from jax.experimental import pallas as pl
from jax.experimental.pallas import tpu as pltpu


def make_sinusoidal_pe(seq_length: int, pe_features: int, dtype=jnp.float32):
    """Sinusoidal positional-encoding buffer, identical to the PyTorch __init__."""
    position = jnp.arange(seq_length, dtype=jnp.float32)[:, None]          # (S, 1)
    div_term = jnp.exp(
        jnp.arange(0, pe_features, 2, dtype=jnp.float32)
        * (-math.log(10000.0) / pe_features)
    )                                                                       # (ceil(F/2),)
    angles = position * div_term                                            # (S, ceil(F/2))
    pe = jnp.zeros((seq_length, pe_features), dtype=jnp.float32)
    pe = pe.at[:, 0::2].set(jnp.sin(angles))
    # Guard odd pe_features: the 1::2 slice has floor(F/2) columns.
    pe = pe.at[:, 1::2].set(jnp.cos(angles)[:, : pe_features // 2])
    return pe.astype(dtype)


def _pe_add_kernel(x_ref, pe_ref, o_ref):
    # Pure vld/vadd/vst stream; pe broadcasts over any leading batch-block axis.
    o_ref[...] = x_ref[...] + pe_ref[...]


def _sublane_multiple(dtype) -> int:
    """Native sublane packing multiple for the second-minor dim."""
    itemsize = jnp.dtype(dtype).itemsize
    if itemsize >= 4:
        return 8
    if itemsize == 2:
        return 16
    return 32


def _target_tile_bytes() -> int:
    """Per-array tile target, generation aware.

    2 MiB is safe everywhere (v5e's 16 MiB scoped-VMEM default comfortably holds
    2 x (x + out + pe) ~ 9 MiB); bump to 4 MiB on v6e / v7x where there is
    headroom (vmem_limit_bytes is set explicitly anyway).
    """
    conservative = 2 << 20
    try:
        info = pltpu.get_tpu_info()
    except Exception:
        return conservative
    name = ""
    for attr in ("chip_version", "version", "name"):
        v = getattr(info, attr, None)
        if v is not None:
            name += str(v).lower() + " "
    vmem = getattr(info, "vmem_capacity_bytes", 0) or 0
    if "v5" in name:                      # v5e: 16 MiB scoped default
        return conservative
    if vmem >= 64 * 1024 * 1024:          # v6e (128 MiB) / v7x (64 MiB)
        return 4 << 20
    return conservative


def _choose_tiles(B: int, rows: int, cols: int, dtype, target_bytes: int,
                  min_steps: int = 8, min_tile_bytes: int = 256 << 10):
    """Pick (batch_tile, row_tile).

    Invariant: batch_tile > 1 implies row_tile == rows (whole per-batch slab).
    """
    itemsize = jnp.dtype(dtype).itemsize
    sub = _sublane_multiple(dtype)
    row_bytes = max(cols * itemsize, 1)
    slab_bytes = rows * row_bytes

    if slab_bytes >= target_bytes:
        # Large per-batch slab: tile rows, squeeze the batch dim out of blocks.
        bt = 1
        ts = max(sub, (target_bytes // row_bytes) // sub * sub)
        ts = min(ts, rows)
    else:
        # Small per-batch slab: pack several batch elements per block.
        ts = rows
        bt = min(B, max(1, target_bytes // slab_bytes))

    def n_steps(bt_, ts_):
        return pl.cdiv(B, bt_) * pl.cdiv(rows, ts_)

    # Guarantee enough grid steps (v7x has 2 TensorCores; also enables DMA /
    # compute overlap) as long as each step still moves a worthwhile tile.
    while n_steps(bt, ts) < min_steps:
        if bt * ts * row_bytes <= 2 * min_tile_bytes:
            break
        if bt > 1:
            bt = max(1, bt // 2)
            continue
        new_ts = max(sub, ((ts // 2) // sub) * sub)
        if new_ts >= ts:
            break
        ts = new_ts

    return bt, ts


def positional_encoding_add(x: jax.Array, pe: jax.Array) -> jax.Array:
    """output = x + pe, pe broadcast over the batch dimension."""
    B, S, F = x.shape
    assert pe.shape == (S, F)
    pe = pe.astype(x.dtype)  # avoid mixed-precision promotion inside the kernel
    itemsize = jnp.dtype(x.dtype).itemsize

    # Layout: keep the native (S, F) layout unless F is very small; the
    # lane-dense reshape is only worth it when lane padding would dominate
    # (wrapper reshapes can otherwise trigger XLA relayout copies = extra HBM
    # passes, far worse than masked stores on a mem-bound add).
    if F % 128 != 0 and F < 64 and (S * F) % 128 == 0:
        rows, cols = (S * F) // 128, 128
    else:
        rows, cols = S, F

    x2 = x.reshape(B, rows, cols)
    pe2 = pe.reshape(rows, cols)

    target = _target_tile_bytes()
    bt, ts = _choose_tiles(B, rows, cols, x.dtype, target)

    x_tile_bytes = bt * ts * cols * itemsize
    pe_tile_bytes = ts * cols * itemsize
    resident = 2 * (2 * x_tile_bytes + pe_tile_bytes)          # double-buffered x/out/pe
    vmem_limit = int(min(max(resident + (2 << 20), 16 << 20), 48 << 20))

    cost = pl.CostEstimate(
        flops=B * S * F,
        transcendentals=0,
        bytes_accessed=(2 * B + 1) * S * F * itemsize,         # read x, write out, read pe once
    )

    if bt == 1:
        # Row-tiled, batch squeezed.  B innermost: pe's block index (r, 0) is
        # invariant across the inner axis so pe stays resident in VMEM.
        grid = (pl.cdiv(rows, ts), B)
        in_specs = [
            pl.BlockSpec((pl.Squeezed(), ts, cols), lambda r, b: (b, r, 0)),
            pl.BlockSpec((ts, cols), lambda r, b: (r, 0)),
        ]
        out_specs = pl.BlockSpec((pl.Squeezed(), ts, cols), lambda r, b: (b, r, 0))
        dims = ("parallel", "parallel")
    else:
        # Batch-blocked: whole (rows, cols) slab per batch element, bt of them
        # per block; pe broadcasts over the leading block axis in the kernel.
        grid = (pl.cdiv(B, bt),)
        in_specs = [
            pl.BlockSpec((bt, ts, cols), lambda b: (b, 0, 0)),
            pl.BlockSpec((ts, cols), lambda b: (0, 0)),
        ]
        out_specs = pl.BlockSpec((bt, ts, cols), lambda b: (b, 0, 0))
        dims = ("parallel",)

    out = pl.pallas_call(
        _pe_add_kernel,
        out_shape=jax.ShapeDtypeStruct((B, rows, cols), x.dtype),
        grid_spec=pltpu.PrefetchScalarGridSpec(
            num_scalar_prefetch=0,
            grid=grid,
            in_specs=in_specs,
            out_specs=out_specs,
        ),
        compiler_params=pltpu.CompilerParams(
            dimension_semantics=dims,
            vmem_limit_bytes=vmem_limit,
        ),
        cost_estimate=cost,
    )(x2, pe2)

    return out.reshape(B, S, F)


def my_positional_encoding(x: jax.Array, pe: jax.Array, pe_type: str = "add"):
    if pe_type == "add":
        return positional_encoding_add(x, pe)
    else:
        # concat branch: pure memory-layout glue (no compute hot path), done in
        # plain JAX.  Matches torch.cat((x, pe), 1) for 2-D x of shape (S, F).
        # TODO(synk): no Pallas kernel for the concat branch (it is a pure copy).
        return jnp.concatenate((x, pe.astype(x.dtype)), axis=1)


if __name__ == "__main__":
    # Config 1: module-sized shapes (small F -> lane-dense path, batch-blocked).
    batch, seq_length, pe_features = 2, 8, 32
    key = jax.random.PRNGKey(0)
    x = jax.random.normal(key, (batch, seq_length, pe_features), dtype=jnp.float32)
    pe = make_sinusoidal_pe(seq_length, pe_features, dtype=x.dtype)

    out = my_positional_encoding(x, pe, pe_type="add")
    out = jax.block_until_ready(out)

    ref = x + pe[None, :, :]
    assert out.shape == (batch, seq_length, pe_features)
    assert jnp.allclose(out, ref, atol=1e-6, rtol=1e-6)

    # Config 2: lane-aligned F + bf16 (exercises the native-layout path and the
    # dtype-aware sublane rounding).
    x2 = jax.random.normal(jax.random.PRNGKey(0), (2, 16, 128), dtype=jnp.bfloat16)
    pe2 = make_sinusoidal_pe(16, 128, dtype=jnp.bfloat16)
    out2 = jax.block_until_ready(positional_encoding_add(x2, pe2))
    ref2 = x2 + pe2[None, :, :]
    assert jnp.allclose(out2.astype(jnp.float32), ref2.astype(jnp.float32),
                        atol=1e-2, rtol=1e-2)

    print("KERNEL_OK")
</pallas_src>

<mosaic_0001>
module attributes {stable_mosaic.version = 11 : i64} {
  func.func @_pe_add_kernel(%arg0: i32, %arg1: memref<2x2x128xf32, #tpu.memory_space<vmem>>, %arg2: memref<2x128xf32, #tpu.memory_space<vmem>>, %arg3: memref<2x2x128xf32, #tpu.memory_space<vmem>>) attributes {dimension_semantics = [#tpu.dimension_semantics<parallel>], iteration_bounds = array<i64: 1>, scalar_prefetch = 0 : i64, scratch_operands = 0 : i64, tpu.core_type = #tpu.core_type<tc>, window_params = [{transform_indices = @transform_0, window_bounds = array<i64: 2, 2, 128>}, {pipeline_mode = #tpu.pipeline_mode<synchronous>, transform_indices = @transform_1, window_bounds = array<i64: 2, 128>}, {transform_indices = @transform_2, window_bounds = array<i64: 2, 2, 128>}]} {
    %c0 = arith.constant 0 : index
    %c0_0 = arith.constant 0 : index
    %c0_1 = arith.constant 0 : index
    %0 = vector.load %arg1[%c0, %c0_0, %c0_1] : memref<2x2x128xf32, #tpu.memory_space<vmem>>, vector<2x2x128xf32>
    %c0_2 = arith.constant 0 : index
    %c0_3 = arith.constant 0 : index
    %1 = vector.load %arg2[%c0_2, %c0_3] : memref<2x128xf32, #tpu.memory_space<vmem>>, vector<2x128xf32>
    %2 = vector.shape_cast %1 : vector<2x128xf32> to vector<1x2x128xf32>
    %3 = vector.broadcast %2 : vector<1x2x128xf32> to vector<2x2x128xf32>
    %4 = arith.addf %0, %3 : vector<2x2x128xf32>
    %c0_4 = arith.constant 0 : index
    %c0_5 = arith.constant 0 : index
    %c0_6 = arith.constant 0 : index
    %5 = vector.load %arg3[%c0_4, %c0_5, %c0_6] : memref<2x2x128xf32, #tpu.memory_space<vmem>>, vector<2x2x128xf32>
    tpu.vector_store %arg3[%c0_4, %c0_5, %c0_6], %4 {strides = array<i32>} : memref<2x2x128xf32, #tpu.memory_space<vmem>>, vector<2x2x128xf32>,
    return
  }
  func.func @transform_0(%arg0: i32) -> (i32, i32, i32) {
    %c0_i32 = arith.constant 0 : i32
    %c0_i32_0 = arith.constant 0 : i32
    %c0_i32_1 = arith.constant 0 : i32
    return %arg0, %c0_i32, %c0_i32_0 : i32, i32, i32
  }
  func.func @transform_1(%arg0: i32) -> (i32, i32) {
    %c0_i32 = arith.constant 0 : i32
    %c0_i32_0 = arith.constant 0 : i32
    %c0_i32_1 = arith.constant 0 : i32
    return %c0_i32, %c0_i32_0 : i32, i32
  }
  func.func @transform_2(%arg0: i32) -> (i32, i32, i32) {
    %c0_i32 = arith.constant 0 : i32
    %c0_i32_0 = arith.constant 0 : i32
    %c0_i32_1 = arith.constant 0 : i32
    return %arg0, %c0_i32, %c0_i32_0 : i32, i32, i32
  }
}

</mosaic_0001>

<bundles_post_ra>
// kernel: tpu_custom_call.1
= control target key start
LH: loop header
LB: loop body
LE: loop exit
PB: predicated region body
PF: predicated region fallthrough
CT: control target
= control target key end

     0   :  { %7 = vsyncpa [#allocation3], 0  ;;  %s169_s0 = inlined_call_operand.hbm [shape: f32[2,2,128], index: 0, kind: input, shape index: {}]   ;;  %s170_s1 = inlined_call_operand.hbm [shape: f32[2,128], index: 1, kind: input, shape index: {}]   ;;  %s171_s2 = inlined_call_operand.hbm [shape: f32[2,2,128], index: 2, kind: output, shape index: {}]  }
   0x1   :  { %8 = vsyncpa [#allocation6], 0 }
   0x2   :  { %9 = vsyncpa [#allocation4], 0  ;;  %s134_s9 = smov [#allocation2]  }
   0x3   :  { %s15_s10 = sshll.u32 %s134_s9, 4  ;;  %s16_s10 = int_to_ptr.vmem [resolvable:$true] %s15_s10 }
   0x4   :  { %s76_s11 = scalar_lea.vmem %s16_s10, 64  ;;  %p81_p1 = scmp.lt.s32.totalorder %s16_s10, %s16_s10 }
   0x5   :  { %p77_p0 = scmp.ne.s32.totalorder %s16_s10, %s76_s11  ;;  %p82_p2 = scmp.lt.s32.totalorder %s76_s11, %s76_s11 }
   0x7   :  { %p83_p3 = por %p82_p2, %p81_p1 }
   0x9   :  { %p84_p4 = pnand %p83_p3, %p77_p0 }
   0xb   :  { %87 = shalt.err (!%p84_p4)
}
   0xc   :  { %s135_s12 = smov 32   ;;  %s136_s13 = smov 2  }
   0xd   :  { %21 = dma.hbm_to_vmem [thread:$0]  %s169_s0, 64, %s16_s10, [#allocation3], %s135_s12, %s135_s12, %s136_s13  }
   0xe   :  { %s137_s16 = smov [#allocation5]  }
   0xf   :  { %s28_s17 = sshll.u32 %s137_s16, 4  ;;  %s29_s17 = int_to_ptr.vmem [resolvable:$true] %s28_s17 }
  0x10   :  { %s96_s18 = scalar_lea.vmem %s29_s17, 32  ;;  %p101_p6 = scmp.lt.s32.totalorder %s29_s17, %s29_s17 }
  0x11   :  { %p97_p5 = scmp.ne.s32.totalorder %s29_s17, %s96_s18  ;;  %p102_p7 = scmp.lt.s32.totalorder %s96_s18, %s96_s18 }
  0x13   :  { %p103_p8 = por %p102_p7, %p101_p6 }
  0x15   :  { %p104_p9 = pnand %p103_p8, %p97_p5 }
  0x17   :  { %107 = shalt.err (!%p104_p9)
}
  0x18   :  { %31 = dma.hbm_to_vmem [thread:$0]  %s170_s1, 32, %s29_s17, [#allocation6]  }
  0x19   :  { %128 = dma.done.wait [#allocation3], 64  }
  0x1a   :  { %129 = vsyncadd [#allocation3], 4294967232 }
  0x1b   :  { %130 = dma.done.wait [#allocation6], 32  }
  0x1c   :  { %131 = vsyncadd [#allocation6], 4294967264  ;;  %s138_s21 = smov [#allocation7]   ;;  %v38_v0 = vld [vmem:[#allocation2] sm:$0x3] }
  0x1d   :  { %s50_s0 = sshll.u32 %s138_s21, 4  ;;  %v40_v1 = vld [vmem:[#allocation5] sm:$0x3]  ;;  %v39_v2 = vld [vmem:[#allocation2 + $0x2] sm:$0x3]  ;;  %s51_s0 = int_to_ptr.vmem [resolvable:$true] %s50_s0 }
  0x1e   :  { %v41_v3 = vadd.f32 %v40_v1, %v38_v0  ;;  %v42_v4 = vadd.f32 %v40_v1, %v39_v2  ;;  %s108_s22 = scalar_lea.vmem %s51_s0, 64  ;;  %p113_p11 = scmp.lt.s32.totalorder %s51_s0, %s51_s0 }
  0x1f   :  { %p109_p10 = scmp.ne.s32.totalorder %s51_s0, %s108_s22  ;;  %p114_p12 = scmp.lt.s32.totalorder %s108_s22, %s108_s22 }
  0x20   :  { %43 = vst [vmem:[#allocation7] sm:$0x3] %v41_v3  ;;  %44 = vst [vmem:[#allocation7 + $0x2] sm:$0x3] %v42_v4 }
  0x21   :  { %p115_p13 = por %p114_p12, %p113_p11 }
  0x23   :  { %p116_p0 = pnand %p115_p13, %p109_p10 }
  0x25   :  { %119 = shalt.err (!%p116_p0)
}
  0x26   :  { %56 = dma.vmem_to_hbm [thread:$0]  %s51_s0, 64, %s171_s2, [#allocation4], %s135_s12, %s135_s12, %s136_s13  }
  0x27   :  { %132 = dma.done.wait [#allocation4], 64  }
  0x28   :  { %133 = vsyncadd [#allocation4], 4294967232 }
  0x29   :  { %60 = vsyncpa [#allocation3], 1 }
  0x2a   :  { %61 = vsyncpa [#allocation6], 1 }
  0x2b   :  { %62 = vsyncpa [#allocation4], 1 }

</bundles_post_ra>
